<compile_context>
chip_gen: v6e
topology: v6e:2x2x1
jax: 0.10.0
libtpu: 0.0.40
codegen_flags: <defaults>
</compile_context>

<pallas_src>
import functools

import jax
import jax.numpy as jnp
from jax.experimental import pallas as pl
from jax.experimental.pallas import tpu as pltpu


def _round_up(x: int, n: int) -> int:
    return ((x + n - 1) // n) * n


def _vmem_capacity_bytes() -> int:
    """Per-TensorCore physical VMEM; conservative 64 MiB fallback (v7x)."""
    try:
        info = pltpu.get_tpu_info()
        cap = getattr(info, "vmem_capacity_bytes", None)
        if cap:
            return int(cap)
    except Exception:
        pass
    return 64 << 20


def _choose_bff(d_ff: int, max_bff: int):
    """Pick a hidden-dim tile size.

    Preference order:
      1. d_ff itself if it fits the budget (K == 1, no padding).
      2. The largest 256-aligned divisor of d_ff <= max_bff, then 128-aligned
         (no padding, lane-dense, MXU-friendly).
      3. Fallback: largest 128-multiple <= max_bff with zero-padded d_ff.
    Returns (bff, ff_pad).
    """
    max_bff = max(128, max_bff)
    if d_ff <= max_bff:
        return d_ff, d_ff
    for align in (256, 128):
        c = (max_bff // align) * align
        while c >= align:
            if d_ff % c == 0:
                return c, d_ff
            c -= align
    bff = (max_bff // 128) * 128
    return bff, _round_up(d_ff, bff)


def ffn_kernel_fused(x_ref, w1_ref, b1_ref, w2_ref, b2_ref, o_ref):
    """d_ff fits in a single tile: no accumulator scratch needed."""
    h = jnp.dot(x_ref[...], w1_ref[...], preferred_element_type=jnp.float32)
    h = jnp.maximum(h + b1_ref[...].astype(jnp.float32), 0.0)
    # dropout (eval mode) == identity
    y = jnp.dot(h.astype(w2_ref.dtype), w2_ref[...],
                preferred_element_type=jnp.float32)
    o_ref[...] = (y + b2_ref[...].astype(jnp.float32)).astype(o_ref.dtype)


def ffn_kernel_acc(x_ref, w1_ref, b1_ref, w2_ref, b2_ref, o_ref, acc_ref):
    """d_ff tiled along grid axis 1; f32 VMEM accumulator carried across it."""
    k = pl.program_id(1)

    @pl.when(k == 0)
    def _():
        acc_ref[...] = jnp.zeros_like(acc_ref)

    # linear_1 (native-dtype operands -> MXU, f32 accumulate) + bias + relu
    h = jnp.dot(x_ref[...], w1_ref[...], preferred_element_type=jnp.float32)
    h = jnp.maximum(h + b1_ref[...].astype(jnp.float32), 0.0)

    # dropout (eval mode) == identity

    # linear_2 partial product for this d_ff tile, accumulated in f32
    acc_ref[...] += jnp.dot(h.astype(w2_ref.dtype), w2_ref[...],
                            preferred_element_type=jnp.float32)

    @pl.when(k == pl.num_programs(1) - 1)
    def _():
        o_ref[...] = (acc_ref[...] + b2_ref[...].astype(jnp.float32)).astype(o_ref.dtype)


@functools.partial(jax.jit, static_argnames=("block_m", "block_ff"))
def feed_forward_block(x, w1_t, b1, w2_t, b2, *, block_m=512, block_ff=None):
    """x: (batch, seq, d_model) -> (batch, seq, d_model).

    w1_t: (d_model, d_ff), b1: (d_ff,), w2_t: (d_ff, d_model), b2: (d_model,).
    Weights may be f32 or bf16; accumulation is always f32.
    block_ff=None -> auto-sized from per-generation VMEM capacity.
    """
    batch, seq, d_model = x.shape
    d_ff = w1_t.shape[1]
    m = batch * seq

    isz_x = jnp.dtype(x.dtype).itemsize
    isz_w = jnp.dtype(w1_t.dtype).itemsize

    # ---- token-axis tiling: keep bm large (weight re-stream scales with 1/bm) ----
    row_align = 8 if isz_x >= 4 else (16 if isz_x == 2 else 32)
    bm = min(block_m, _round_up(m, row_align))
    bm = max(row_align, _round_up(bm, row_align))
    m_pad = _round_up(m, bm)
    grid_m = m_pad // bm

    # ---- hidden-axis tiling from the per-generation VMEM budget ----
    # When VMEM is tight we shrink bff, never bm (bff does not change weight
    # HBM traffic per useful FLOP; bm does).
    vmem_cap = _vmem_capacity_bytes()
    usable = int(0.90 * vmem_cap) - (4 << 20)
    fixed = (2 * bm * d_model * isz_x        # x tiles (double-buffered)
             + 2 * bm * d_model * isz_x      # out tiles
             + bm * d_model * 4              # f32 accumulator scratch
             + 2 * d_model * isz_w)          # b2
    per_bff = (4 * d_model * isz_w           # W1 + W2 tile columns, double-buffered
               + 2 * isz_w                   # b1 tile
               + bm * (4 + isz_w))           # f32 hidden activation + cast copy
    max_bff = max(128, (usable - fixed) // per_bff)
    if block_ff is not None:
        max_bff = min(max_bff, block_ff)
    bff, ff_pad = _choose_bff(d_ff, max_bff)
    num_k = ff_pad // bff

    # ---- operand prep (weight padding only on the rare ragged fallback path) ----
    x2d = x.reshape(m, d_model)
    if m_pad != m:
        x2d = jnp.pad(x2d, ((0, m_pad - m), (0, 0)))

    w1p = w1_t
    b1p = b1.reshape(1, d_ff)
    w2p = w2_t
    if ff_pad != d_ff:
        # zero-padded hidden units contribute relu(0 + 0) @ 0 == 0
        w1p = jnp.pad(w1p, ((0, 0), (0, ff_pad - d_ff)))
        b1p = jnp.pad(b1p, ((0, 0), (0, ff_pad - d_ff)))
        w2p = jnp.pad(w2p, ((0, ff_pad - d_ff), (0, 0)))
    b2p = b2.reshape(1, d_model)

    # ---- honest VMEM + cost accounting ----
    vmem_bytes = (
        2 * bm * d_model * isz_x                   # x tiles
        + 2 * bm * d_model * isz_x                 # out tiles
        + 2 * (d_model * bff + bff) * isz_w        # W1 + b1 tiles
        + 2 * (bff * d_model + d_model) * isz_w    # W2 + b2 tiles
        + (bm * d_model * 4 if num_k > 1 else 0)   # f32 accumulator scratch
        + bm * bff * (4 + isz_w)                   # f32 hidden + cast temporary
    )
    vmem_limit = max(16 << 20,
                     min(int(1.25 * vmem_bytes) + (2 << 20), int(0.95 * vmem_cap)))

    weight_bytes = (w1p.size + b1p.size + w2p.size + b2p.size) * isz_w
    cost = pl.CostEstimate(
        flops=2 * 2 * m_pad * d_model * ff_pad,
        transcendentals=0,
        bytes_accessed=2 * m_pad * d_model * isz_x + grid_m * weight_bytes,
    )

    if num_k == 1:
        kernel = ffn_kernel_fused
        scratch = []
    else:
        kernel = ffn_kernel_acc
        scratch = [pltpu.VMEM((bm, d_model), jnp.float32)]

    out2d = pl.pallas_call(
        kernel,
        out_shape=jax.ShapeDtypeStruct((m_pad, d_model), x.dtype),
        grid_spec=pltpu.PrefetchScalarGridSpec(
            num_scalar_prefetch=0,
            grid=(grid_m, num_k),
            in_specs=[
                pl.BlockSpec((bm, d_model), lambda i, k: (i, 0)),    # x tile
                pl.BlockSpec((d_model, bff), lambda i, k: (0, k)),   # W1_t tile
                pl.BlockSpec((1, bff), lambda i, k: (0, k)),         # b1 tile
                pl.BlockSpec((bff, d_model), lambda i, k: (k, 0)),   # W2_t tile
                pl.BlockSpec((1, d_model), lambda i, k: (0, 0)),     # b2
            ],
            out_specs=pl.BlockSpec((bm, d_model), lambda i, k: (i, 0)),
            scratch_shapes=scratch,
        ),
        compiler_params=pltpu.CompilerParams(
            dimension_semantics=("parallel", "arbitrary"),
            vmem_limit_bytes=vmem_limit,
        ),
        cost_estimate=cost,
    )(x2d, w1p, b1p, w2p, b2p)

    return out2d[:m].reshape(batch, seq, d_model)


def init_params(key, d_model, d_ff, dtype=jnp.float32):
    """nn.Linear-style init: U(-1/sqrt(fan_in), 1/sqrt(fan_in)); weights pre-transposed."""
    k1, k2, k3, k4 = jax.random.split(key, 4)
    lim1 = 1.0 / (d_model ** 0.5)
    lim2 = 1.0 / (d_ff ** 0.5)
    w1_t = jax.random.uniform(k1, (d_model, d_ff), dtype, -lim1, lim1)   # = W1.T
    b1 = jax.random.uniform(k2, (d_ff,), dtype, -lim1, lim1)
    w2_t = jax.random.uniform(k3, (d_ff, d_model), dtype, -lim2, lim2)   # = W2.T
    b2 = jax.random.uniform(k4, (d_model,), dtype, -lim2, lim2)
    return w1_t, b1, w2_t, b2


if __name__ == "__main__":
    key = jax.random.PRNGKey(0)

    # Test 1: small lane-dense shapes; d_ff fits one tile -> fused (no-scratch) path.
    d_model, d_ff = 128, 256
    batch, seq = 2, 8
    kx, kp = jax.random.split(key)
    x = jax.random.normal(kx, (batch, seq, d_model), jnp.float32)
    w1_t, b1, w2_t, b2 = init_params(kp, d_model, d_ff)

    out = jax.block_until_ready(feed_forward_block(x, w1_t, b1, w2_t, b2))
    ref = jnp.maximum(x @ w1_t + b1, 0.0) @ w2_t + b2
    assert out.shape == (batch, seq, d_model)
    assert jnp.allclose(out, ref, atol=2e-4, rtol=2e-4), \
        float(jnp.max(jnp.abs(out - ref)))

    # Test 2: exercises token-axis padding (m=10 -> 16 rows) and the d_ff-tiled
    # accumulator path (d_ff=384 with bff=128 divisor -> 3 hidden tiles, no weight pad).
    d_model2, d_ff2 = 128, 384
    batch2, seq2 = 2, 5
    kx2, kp2 = jax.random.split(kp)
    x2 = jax.random.normal(kx2, (batch2, seq2, d_model2), jnp.float32)
    p2 = init_params(kp2, d_model2, d_ff2)

    out2 = jax.block_until_ready(feed_forward_block(x2, *p2, block_ff=128))
    ref2 = jnp.maximum(x2 @ p2[0] + p2[1], 0.0) @ p2[2] + p2[3]
    assert out2.shape == (batch2, seq2, d_model2)
    assert jnp.allclose(out2, ref2, atol=2e-4, rtol=2e-4), \
        float(jnp.max(jnp.abs(out2 - ref2)))

    print("KERNEL_OK")
</pallas_src>

<mosaic_0001>
module attributes {stable_mosaic.version = 11 : i64} {
  func.func @ffn_kernel_fused(%arg0: i32, %arg1: i32, %arg2: memref<16x128xf32, #tpu.memory_space<vmem>>, %arg3: memref<128x256xf32, #tpu.memory_space<vmem>>, %arg4: memref<1x256xf32, #tpu.memory_space<vmem>>, %arg5: memref<256x128xf32, #tpu.memory_space<vmem>>, %arg6: memref<1x128xf32, #tpu.memory_space<vmem>>, %arg7: memref<16x128xf32, #tpu.memory_space<vmem>>) attributes {dimension_semantics = [#tpu.dimension_semantics<parallel>, #tpu.dimension_semantics<arbitrary>], iteration_bounds = array<i64: 1, 1>, scalar_prefetch = 0 : i64, scratch_operands = 0 : i64, tpu.core_type = #tpu.core_type<tc>, window_params = [{transform_indices = @transform_0, window_bounds = array<i64: 16, 128>}, {transform_indices = @transform_1, window_bounds = array<i64: 128, 256>}, {transform_indices = @transform_2, window_bounds = array<i64: 1, 256>}, {transform_indices = @transform_3, window_bounds = array<i64: 256, 128>}, {pipeline_mode = #tpu.pipeline_mode<synchronous>, transform_indices = @transform_4, window_bounds = array<i64: 1, 128>}, {transform_indices = @transform_5, window_bounds = array<i64: 16, 128>}]} {
    %c0 = arith.constant 0 : index
    %c0_0 = arith.constant 0 : index
    %0 = vector.load %arg2[%c0, %c0_0] : memref<16x128xf32, #tpu.memory_space<vmem>>, vector<16x128xf32>
    %c0_1 = arith.constant 0 : index
    %c0_2 = arith.constant 0 : index
    %1 = vector.load %arg3[%c0_1, %c0_2] : memref<128x256xf32, #tpu.memory_space<vmem>>, vector<128x256xf32>
    %cst = arith.constant dense<0.000000e+00> : vector<16x256xf32>
    %2 = tpu.matmul %0, %1, %cst {dimension_numbers = #tpu.dot_dimension_numbers<[1], [0], [0], [1], [0, 0, 1, 1], [], []>} : vector<16x128xf32>, vector<128x256xf32>, vector<16x256xf32> -> vector<16x256xf32>
    %c0_3 = arith.constant 0 : index
    %c0_4 = arith.constant 0 : index
    %3 = vector.load %arg4[%c0_3, %c0_4] : memref<1x256xf32, #tpu.memory_space<vmem>>, vector<1x256xf32>
    %4 = vector.broadcast %3 : vector<1x256xf32> to vector<16x256xf32>
    %5 = arith.addf %2, %4 : vector<16x256xf32>
    %cst_5 = arith.constant 0.000000e+00 : f32
    %6 = vector.broadcast %cst_5 : f32 to vector<16x256xf32>
    %7 = arith.maximumf %5, %6 : vector<16x256xf32>
    %c0_6 = arith.constant 0 : index
    %c0_7 = arith.constant 0 : index
    %8 = vector.load %arg5[%c0_6, %c0_7] : memref<256x128xf32, #tpu.memory_space<vmem>>, vector<256x128xf32>
    %cst_8 = arith.constant dense<0.000000e+00> : vector<16x128xf32>
    %9 = tpu.matmul %7, %8, %cst_8 {dimension_numbers = #tpu.dot_dimension_numbers<[1], [0], [0], [1], [0, 0, 1, 1], [], []>} : vector<16x256xf32>, vector<256x128xf32>, vector<16x128xf32> -> vector<16x128xf32>
    %c0_9 = arith.constant 0 : index
    %c0_10 = arith.constant 0 : index
    %10 = vector.load %arg6[%c0_9, %c0_10] : memref<1x128xf32, #tpu.memory_space<vmem>>, vector<1x128xf32>
    %11 = vector.broadcast %10 : vector<1x128xf32> to vector<16x128xf32>
    %12 = arith.addf %9, %11 : vector<16x128xf32>
    %c0_11 = arith.constant 0 : index
    %c0_12 = arith.constant 0 : index
    %13 = vector.load %arg7[%c0_11, %c0_12] : memref<16x128xf32, #tpu.memory_space<vmem>>, vector<16x128xf32>
    tpu.vector_store %arg7[%c0_11, %c0_12], %12 {strides = array<i32>} : memref<16x128xf32, #tpu.memory_space<vmem>>, vector<16x128xf32>,
    return
  }
  func.func @transform_0(%arg0: i32, %arg1: i32) -> (i32, i32) {
    %c0_i32 = arith.constant 0 : i32
    %c0_i32_0 = arith.constant 0 : i32
    return %arg0, %c0_i32 : i32, i32
  }
  func.func @transform_1(%arg0: i32, %arg1: i32) -> (i32, i32) {
    %c0_i32 = arith.constant 0 : i32
    %c0_i32_0 = arith.constant 0 : i32
    return %c0_i32, %arg1 : i32, i32
  }
  func.func @transform_2(%arg0: i32, %arg1: i32) -> (i32, i32) {
    %c0_i32 = arith.constant 0 : i32
    %c0_i32_0 = arith.constant 0 : i32
    return %c0_i32, %arg1 : i32, i32
  }
  func.func @transform_3(%arg0: i32, %arg1: i32) -> (i32, i32) {
    %c0_i32 = arith.constant 0 : i32
    %c0_i32_0 = arith.constant 0 : i32
    return %arg1, %c0_i32 : i32, i32
  }
  func.func @transform_4(%arg0: i32, %arg1: i32) -> (i32, i32) {
    %c0_i32 = arith.constant 0 : i32
    %c0_i32_0 = arith.constant 0 : i32
    %c0_i32_1 = arith.constant 0 : i32
    return %c0_i32, %c0_i32_0 : i32, i32
  }
  func.func @transform_5(%arg0: i32, %arg1: i32) -> (i32, i32) {
    %c0_i32 = arith.constant 0 : i32
    %c0_i32_0 = arith.constant 0 : i32
    return %arg0, %c0_i32 : i32, i32
  }
}

</mosaic_0001>

<bundles_post_ra>
// kernel: feed_forward_block.1
= control target key start
LH: loop header
LB: loop body
LE: loop exit
PB: predicated region body
PF: predicated region fallthrough
CT: control target
= control target key end

     0   :  { %10 = vsyncpa [#allocation3], 0  ;;  %s525_s0 = inlined_call_operand.hbm [shape: f32[16,128], index: 0, kind: input, shape index: {}]   ;;  %s526_s1 = inlined_call_operand.hbm [shape: f32[128,256], index: 1, kind: input, shape index: {}]   ;;  %s527_s2 = inlined_call_operand.vmem [shape: f32[1,256], index: 2, kind: input, shape index: {}]   ;;  %s528_s3 = inlined_call_operand.hbm [shape: f32[256,128], index: 3, kind: input, shape index: {}]   ;;  %s529_s4 = inlined_call_operand.vmem [shape: f32[1,128], index: 4, kind: input, shape index: {}]   ;;  %s530_s5 = inlined_call_operand.hbm [shape: f32[16,128], index: 5, kind: output, shape index: {}]  }
   0x1   :  { %11 = vsyncpa [#allocation6], 0 }
   0x2   :  { %12 = vsyncpa [#allocation4], 0  ;;  %s457_s18 = smov [#allocation5]  }
   0x3   :  { %s30_s19 = sshll.u32 %s457_s18, 4  ;;  %s31_s19 = int_to_ptr.vmem [resolvable:$true] %s30_s19 }
   0x4   :  { %s379_s20 = scalar_lea.vmem %s31_s19, 4096  ;;  %p384_p1 = scmp.lt.s32.totalorder %s31_s19, %s31_s19 }
   0x5   :  { %p380_p0 = scmp.ne.s32.totalorder %s31_s19, %s379_s20  ;;  %p385_p2 = scmp.lt.s32.totalorder %s379_s20, %s379_s20 }
   0x7   :  { %p386_p3 = por %p385_p2, %p384_p1 }
   0x9   :  { %p387_p4 = pnand %p386_p3, %p380_p0 }
   0xb   :  { %390 = shalt.err (!%p387_p4)
}
   0xc   :  { %s458_s21 = smov 256   ;;  %s459_s22 = smov 16  }
   0xd   :  { %36 = dma.hbm_to_vmem [thread:$0]  %s526_s1, 4096, %s31_s19, [#allocation6], %s458_s21, %s458_s21, %s459_s22  }
   0xe   :  { %s460_s25 = smov [#allocation2]  }
   0xf   :  { %s18_s26 = sshll.u32 %s460_s25, 4  ;;  %s19_s26 = int_to_ptr.vmem [resolvable:$true] %s18_s26 }
  0x10   :  { %s399_s27 = scalar_lea.vmem %s19_s26, 256  ;;  %p404_p6 = scmp.lt.s32.totalorder %s19_s26, %s19_s26 }
  0x11   :  { %p400_p5 = scmp.ne.s32.totalorder %s19_s26, %s399_s27  ;;  %p405_p7 = scmp.lt.s32.totalorder %s399_s27, %s399_s27 }
  0x13   :  { %p406_p8 = por %p405_p7, %p404_p6 }
  0x15   :  { %p407_p9 = pnand %p406_p8, %p400_p5 }
  0x17   :  { %410 = shalt.err (!%p407_p9)
}
  0x18   :  { %s461_s28 = smov 128   ;;  %s462_s29 = smov 8  }
  0x19   :  { %24 = dma.hbm_to_vmem [thread:$0]  %s525_s0, 256, %s19_s26, [#allocation3], %s461_s28, %s461_s28, %s462_s29  }
  0x1a   :  { %s463_s1 = smov [#allocation7]  }
  0x1b   :  { %s44_s7 = sshll.u32 %s463_s1, 4  ;;  %s45_s7 = int_to_ptr.vmem [resolvable:$true] %s44_s7 }
  0x1c   :  { %s419_s8 = scalar_lea.vmem %s45_s7, 4096  ;;  %p424_p11 = scmp.lt.s32.totalorder %s45_s7, %s45_s7 }
  0x1d   :  { %p420_p10 = scmp.ne.s32.totalorder %s45_s7, %s419_s8  ;;  %p425_p12 = scmp.lt.s32.totalorder %s419_s8, %s419_s8 }
  0x1f   :  { %p426_p13 = por %p425_p12, %p424_p11 }
  0x21   :  { %p427_p0 = pnand %p426_p13, %p420_p10 }
  0x23   :  { %430 = shalt.err (!%p427_p0)
}
  0x24   :  { %50 = dma.hbm_to_vmem [thread:$0]  %s528_s3, 4096, %s45_s7, [#allocation6], %s461_s28, %s461_s28, %s462_s29  }
  0x25   :  { %451 = dma.done.wait [#allocation3], 256  }
  0x26   :  { %452 = vsyncadd [#allocation3], 4294967040 }
  0x27   :  { %453 = dma.done.wait [#allocation6], 8192  }
  0x28   :  { %454 = vsyncadd [#allocation6], 4294959104  ;;  %v464_v0 = vmov 0.0   ;;  %v95_v1 = vld [vmem:[#allocation5 + $0xf8] sm:$0xff]  ;;  %v94_v2 = vld [vmem:[#allocation5 + $0xf0] sm:$0xff]  ;;  %s465_s12 = smov [#allocation8]  }
  0x29   :  { %172 = vmatprep.mubr.f32.mxu0 %v464_v0  ;;  %v93_v3 = vld [vmem:[#allocation5 + $0xe8] sm:$0xff]  ;;  %108 = vmatprep.subr.mxu0 %v95_v1  ;;  %v92_v4 = vld [vmem:[#allocation5 + $0xe0] sm:$0xff]  ;;  %v91_v5 = vld [vmem:[#allocation5 + $0xd8] sm:$0xff]  ;;  %s310_s13 = sshll.u32 %s465_s12, 4  ;;  %s311_s13 = int_to_ptr.vmem [resolvable:$true] %s310_s13 }
  0x2a   :  { %109 = vmatpush1.msra.mxu0 %v94_v2  ;;  %v90_v6 = vld [vmem:[#allocation5 + $0xd0] sm:$0xff]  ;;  %v89_v7 = vld [vmem:[#allocation5 + $0xc8] sm:$0xff]  ;;  %v88_v8 = vld [vmem:[#allocation5 + $0xc0] sm:$0xff]  ;;  %s431_s14 = scalar_lea.vmem %s311_s13, 256  ;;  %p436_p2 = scmp.lt.s32.totalorder %s311_s13, %s311_s13 }
  0x2b   :  { %110 = vmatprep.subr.mxu0 %v93_v3  ;;  %v87_v9 = vld [vmem:[#allocation5 + $0xb8] sm:$0xff]  ;;  %v86_v10 = vld [vmem:[#allocation5 + $0xb0] sm:$0xff]  ;;  %v85_v11 = vld [vmem:[#allocation5 + $0xa8] sm:$0xff]  ;;  %p432_p1 = scmp.ne.s32.totalorder %s311_s13, %s431_s14  ;;  %p437_p3 = scmp.lt.s32.totalorder %s431_s14, %s431_s14 }
  0x2c   :  { %111 = vmatpush1.msra.mxu0 %v92_v4  ;;  %v84_v12 = vld [vmem:[#allocation5 + $0xa0] sm:$0xff]  ;;  %v83_v13 = vld [vmem:[#allocation5 + $0x98] sm:$0xff]  ;;  %v82_v14 = vld [vmem:[#allocation5 + $0x90] sm:$0xff] }
  0x2d   :  { %112 = vmatprep.subr.mxu0 %v91_v5  ;;  %v220_v15 = vld [vmem:[#allocation7 + $0xf8] sm:$0xff]  ;;  %v81_v17 = vld [vmem:[#allocation5 + $0x88] sm:$0xff]  ;;  %v219_v18 = vld [vmem:[#allocation7 + $0xf0] sm:$0xff]  ;;  %p438_p4 = por %p437_p3, %p436_p2 }
  0x2e   :  { %113 = vmatpush1.msra.mxu0 %v90_v6  ;;  %v204_v16 = vld [vmem:[#allocation7 + $0x78] sm:$0xff]  ;;  %324 = vmatprep.subr.mxu1 %v220_v15  ;;  %v203_v19 = vld [vmem:[#allocation7 + $0x70] sm:$0xff]  ;;  %v80_v20 = vld [vmem:[#allocation5 + $0x80] sm:$0xff] }
  0x2f   :  { %114 = vmatprep.subr.mxu0 %v89_v7  ;;  %325 = vmatpush3.msra.mxu1 %v204_v16  ;;  %v218_v21 = vld [vmem:[#allocation7 + $0xe8] sm:$0xff]  ;;  %v79_v22 = vld [vmem:[#allocation5 + $0x78] sm:$0xff]  ;;  %v78_v24 = vld [vmem:[#allocation5 + $0x70] sm:$0xff]  ;;  %p439_p5 = pnand %p438_p4, %p432_p1 }
  0x30   :  { %115 = vmatpush1.msra.mxu0 %v88_v8  ;;  %326 = vmatprep.subr.mxu1 %v219_v18  ;;  %v202_v23 = vld [vmem:[#allocation7 + $0x68] sm:$0xff]  ;;  %v217_v25 = vld [vmem:[#allocation7 + $0xe0] sm:$0xff]  ;;  %v216_v29 = vld [vmem:[#allocation7 + $0xd8] sm:$0xff] }
  0x31   :  { %116 = vmatprep.subr.mxu0 %v87_v9  ;;  %327 = vmatpush3.msra.mxu1 %v203_v19  ;;  %v77_v26 = vld [vmem:[#allocation5 + $0x68] sm:$0xff]  ;;  %v201_v27 = vld [vmem:[#allocation7 + $0x60] sm:$0xff]  ;;  %v75_v30 = vld [vmem:[#allocation5 + $0x58] sm:$0xff] }
  0x32   :  { %117 = vmatpush1.msra.mxu0 %v86_v10  ;;  %328 = vmatprep.subr.mxu1 %v218_v21  ;;  %v76_v28 = vld [vmem:[#allocation5 + $0x60] sm:$0xff]  ;;  %v200_v31 = vld [vmem:[#allocation7 + $0x58] sm:$0xff]  ;;  %v74_v32 = vld [vmem:[#allocation5 + $0x50] sm:$0xff] }
  0x33   :  { %118 = vmatprep.subr.mxu0 %v85_v11  ;;  %329 = vmatpush3.msra.mxu1 %v202_v23  ;;  %v215_v33 = vld [vmem:[#allocation7 + $0xd0] sm:$0xff]  ;;  %v73_v34 = vld [vmem:[#allocation5 + $0x48] sm:$0xff]  ;;  %v72_v36 = vld [vmem:[#allocation5 + $0x40] sm:$0xff] }
  0x34   :  { %119 = vmatpush1.msra.mxu0 %v84_v12  ;;  %330 = vmatprep.subr.mxu1 %v217_v25  ;;  %v199_v35 = vld [vmem:[#allocation7 + $0x50] sm:$0xff]  ;;  %v214_v37 = vld [vmem:[#allocation7 + $0xc8] sm:$0xff]  ;;  %v71_v38 = vld [vmem:[#allocation5 + $0x38] sm:$0xff] }
  0x35   :  { %120 = vmatprep.subr.mxu0 %v83_v13  ;;  %331 = vmatpush3.msra.mxu1 %v201_v27  ;;  %v198_v39 = vld [vmem:[#allocation7 + $0x48] sm:$0xff]  ;;  %v70_v40 = vld [vmem:[#allocation5 + $0x30] sm:$0xff]  ;;  %v213_v41 = vld [vmem:[#allocation7 + $0xc0] sm:$0xff] }
  0x36   :  { %121 = vmatpush1.msra.mxu0 %v82_v14  ;;  %332 = vmatprep.subr.mxu1 %v216_v29  ;;  %v69_v42 = vld [vmem:[#allocation5 + $0x28] sm:$0xff]  ;;  %v197_v43 = vld [vmem:[#allocation7 + $0x40] sm:$0xff]  ;;  %v212_v45 = vld [vmem:[#allocation7 + $0xb8] sm:$0xff] }
  0x37   :  { %122 = vmatprep.subr.mxu0 %v81_v17  ;;  %333 = vmatpush3.msra.mxu1 %v200_v31  ;;  %v68_v44 = vld [vmem:[#allocation5 + $0x20] sm:$0xff]  ;;  %v67_v46 = vld [vmem:[#allocation5 + $0x18] sm:$0xff]  ;;  %v66_v48 = vld [vmem:[#allocation5 + $0x10] sm:$0xff] }
  0x38   :  { %123 = vmatpush1.msra.mxu0 %v80_v20  ;;  %334 = vmatprep.subr.mxu1 %v215_v33  ;;  %v196_v47 = vld [vmem:[#allocation7 + $0x38] sm:$0xff]  ;;  %v211_v49 = vld [vmem:[#allocation7 + $0xb0] sm:$0xff]  ;;  %v65_v50 = vld [vmem:[#allocation5 + $0x8] sm:$0xff] }
  0x39   :  { %124 = vmatprep.subr.mxu0 %v79_v22  ;;  %335 = vmatpush3.msra.mxu1 %v199_v35  ;;  %v195_v51 = vld [vmem:[#allocation7 + $0x30] sm:$0xff]  ;;  %v64_v52 = vld [vmem:[#allocation5] sm:$0xff]  ;;  %v210_v53 = vld [vmem:[#allocation7 + $0xa8] sm:$0xff] }
  0x3a   :  { %125 = vmatpush1.msra.mxu0 %v78_v24  ;;  %336 = vmatprep.subr.mxu1 %v214_v37  ;;  %v62_v54 = vld [vmem:[#allocation2] sm:$0xff]  ;;  %v194_v55 = vld [vmem:[#allocation7 + $0x28] sm:$0xff]  ;;  %v209_v56 = vld [vmem:[#allocation7 + $0xa0] sm:$0xff] }
  0x3b   :  { %126 = vmatprep.subr.mxu0 %v77_v26  ;;  %337 = vmatpush3.msra.mxu1 %v198_v39  ;;  %v193_v57 = vld [vmem:[#allocation7 + $0x20] sm:$0xff]  ;;  %v63_v58 = vld [vmem:[#allocation2 + $0x8] sm:$0xff]  ;;  %v207_v61 = vld [vmem:[#allocation7 + $0x90] sm:$0xff] }
  0x3c   :  { %127 = vmatpush1.msra.mxu0 %v76_v28  ;;  %338 = vmatprep.subr.mxu1 %v213_v41  ;;  %v208_v59 = vld [vmem:[#allocation7 + $0x98] sm:$0xff]  ;;  %v191_v62 = vld [vmem:[#allocation7 + $0x10] sm:$0xff]  ;;  %v206_v63 = vld [vmem:[#allocation7 + $0x88] sm:$0xff] }
  0x3d   :  { %128 = vmatprep.subr.mxu0 %v75_v30  ;;  %339 = vmatpush3.msra.mxu1 %v197_v43  ;;  %v192_v60 = vld [vmem:[#allocation7 + $0x18] sm:$0xff]  ;;  %v190_v1 = vld [vmem:[#allocation7 + $0x8] sm:$0xff]  ;;  %v205_v2 = vld [vmem:[#allocation7 + $0x80] sm:$0xff] }
  0x3e   :  { %129 = vmatpush1.msra.mxu0 %v74_v32  ;;  %340 = vmatprep.subr.mxu1 %v212_v45  ;;  %v189_v3 = vld [vmem:[#allocation7] sm:$0xff]  ;;  %v96_v6 = vld [vmem:[%s527_s2] sm:$0x3] }
  0x3f   :  { %130 = vmatprep.subr.mxu0 %v73_v34  ;;  %341 = vmatpush3.msra.mxu1 %v196_v47  ;;  %v323_v23 = vld [vmem:[%s529_s4] ss:$0 sm:$0xff] }
  0x40   :  { %131 = vmatpush1.msra.mxu0 %v72_v36  ;;  %342 = vmatprep.subr.mxu1 %v211_v49 }
  0x41   :  { %132 = vmatprep.subr.mxu0 %v71_v38  ;;  %343 = vmatpush3.msra.mxu1 %v195_v51 }
  0x42   :  { %133 = vmatpush1.msra.mxu0 %v70_v40  ;;  %344 = vmatprep.subr.mxu1 %v210_v53 }
  0x43   :  { %134 = vmatprep.subr.mxu0 %v69_v42  ;;  %345 = vmatpush3.msra.mxu1 %v194_v55 }
  0x44   :  { %135 = vmatpush1.msra.mxu0 %v68_v44  ;;  %346 = vmatprep.subr.mxu1 %v209_v56 }
  0x45   :  { %136 = vmatprep.subr.mxu0 %v67_v46  ;;  %347 = vmatpush3.msra.mxu1 %v193_v57 }
  0x46   :  { %137 = vmatpush1.msra.mxu0 %v66_v48  ;;  %348 = vmatprep.subr.mxu1 %v208_v59 }
  0x47   :  { %138 = vmatprep.subr.mxu0 %v65_v50  ;;  %349 = vmatpush3.msra.mxu1 %v192_v60 }
  0x48   :  { %139 = vmatpush1.msra.mxu0 %v64_v52  ;;  %350 = vmatprep.subr.mxu1 %v207_v61 }
  0x49   :  { %173 = vmatmul.mubr.f32.vlgmr.msra.gmra.mxu0 %v62_v54  ;;  %351 = vmatpush3.msra.mxu1 %v191_v62 }
  0x4a   :  { %178 = vmatprep.mubr.f32.mxu0 %v464_v0  ;;  %352 = vmatprep.subr.mxu1 %v206_v63  ;;  %v98_v0 = vlaneseq }
  0x4b   :  { %353 = vmatpush3.msra.mxu1 %v190_v1 }
  0x4c   :  { %354 = vmatprep.subr.mxu1 %v205_v2  ;;  %v99_v4 = vshrl.u32 %v98_v0, 7 }
  0x4d   :  { %179 = vmatmul.mubr.f32.gmra.mxu0 %v63_v58  ;;  %355 = vmatpush3.msra.mxu1 %v189_v3 }
  0x4e   :  { %v100_v5 = vsub.s32 0, %v99_v4  ;;  %v104_v7 = vsub.s32 1, %v99_v4 }
  0x50   :  { %v101_v8 = vrot.slane %v96_v6, %v100_v5  ;;  %v105_v9 = vrot.slane %v96_v6, %v104_v7 }
 0x109   :  { %v174_v10 = vpop.f32.mrf.mxu0 }
 0x10a   :  { %v175_v11 = vadd.f32 %v174_v10, %v101_v8 }
 0x10b   :  { %v176_v12 = vpop.f32.mrf.mxu0 }
 0x10c   :  { %v177_v13 = vadd.f32 %v176_v12, %v105_v9  ;;  %v185_v16 = vmax.f32 %v175_v11, 0.0 }
 0x10d   :  { %v180_v14 = vpop.f32.mrf.mxu0 }
 0x10e   :  { %v186_v15 = vmax.f32 %v177_v13, 0.0  ;;  %v181_v17 = vadd.f32 %v180_v14, %v101_v8 }
 0x10f   :  { %v182_v18 = vpop.f32.mrf.mxu0 }
 0x110   :  { %v183_v19 = vadd.f32 %v182_v18, %v105_v9  ;;  %292 = vmatprep.mubr.f32.mxu1 %v186_v15  ;;  %v187_v21 = vmax.f32 %v181_v17, 0.0 }
 0x111   :  { %293 = vmatmul.mubr.f32.vlgmr.msra.gmra.mxu1 %v185_v16 }
 0x112   :  { %v188_v20 = vmax.f32 %v183_v19, 0.0 }
 0x114   :  { %297 = vmatprep.mubr.f32.mxu1 %v188_v20 }
 0x115   :  { %298 = vmatmul.mubr.f32.gmra.mxu1 %v187_v21 }
 0x1d1   :  { %v356_v22 = vpop.f32.mrf.mxu1 }
 0x1d3   :  { %v357_v24 = vpop.f32.mrf.mxu1 }
 0x1d4   :  { %v358_v25 = vadd.f32 %v357_v24, %v356_v22 }
 0x1d5   :  { %v359_v26 = vpop.f32.mrf.mxu1 }
 0x1d6   :  { %v295_v27 = vadd.f32 %v358_v25, %v323_v23 }
 0x1d7   :  { %v360_v28 = vpop.f32.mrf.mxu1 }
 0x1d8   :  { %303 = vst [vmem:[#allocation8] sm:$0xff] %v295_v27  ;;  %v361_v29 = vadd.f32 %v360_v28, %v359_v26 }
 0x1da   :  { %v300_v30 = vadd.f32 %v361_v29, %v323_v23 }
 0x1dc   :  { %304 = vst [vmem:[#allocation8 + $0x8] sm:$0xff] %v300_v30 }
 0x1dd   :  { %442 = shalt.err (!%p439_p5)
}
 0x1de   :  { %316 = dma.vmem_to_hbm [thread:$0]  %s311_s13, 256, %s530_s5, [#allocation4], %s461_s28, %s461_s28, %s462_s29  }
 0x1df   :  { %455 = dma.done.wait [#allocation4], 256  }
 0x1e0   :  { %456 = vsyncadd [#allocation4], 4294967040 }
 0x1e1   :  { %320 = vsyncpa [#allocation3], 1 }
 0x1e2   :  { %321 = vsyncpa [#allocation6], 1 }
 0x1e3   :  { %322 = vsyncpa [#allocation4], 1 }

</bundles_post_ra>
